<compile_context>
chip_gen: v6e
topology: v6e:2x2x1
jax: 0.10.0
libtpu: 0.0.40
codegen_flags: <defaults>
</compile_context>

<pallas_src>
import jax
import jax.numpy as jnp
import numpy as np
from jax.experimental import pallas as pl
from jax.experimental.pallas import tpu as pltpu

_LANE = 128


def identity_kernel(x_ref, o_ref):
    # Hot path: whole-tile copy through VMEM.
    o_ref[...] = x_ref[...]


def _min_sublane_tile(dtype) -> int:
    # Packed sublane count: 8 for 4-byte, 16 for 2-byte, 32 for 1-byte dtypes.
    itemsize = jnp.dtype(dtype).itemsize
    return {4: 8, 2: 16, 1: 32}.get(itemsize, 8)


def _tpu_vmem_config():
    """Returns (vmem_limit_bytes, per_buffer_tile_budget_bytes), generation-aware."""
    # Conservative fallback that is safe on every generation (incl. v7x 64 MiB).
    fallback = (48 << 20, 8 << 20)
    try:
        phys = int(pltpu.get_tpu_info().vmem_capacity_bytes)
    except Exception:
        return fallback
    if phys <= (64 << 20):
        # v7x-class: 64 MiB physical per TC.  Leave headroom for Mosaic
        # internal scratch; ~10 MiB per buffer (4 double-buffered buffers).
        return (48 << 20, 10 << 20)
    # v5e / v6e: 128 MiB physical.  Bigger tiles amortize per-step overhead.
    return (80 << 20, 16 << 20)


def _lane_dense_shape(total):
    """Pick (rows, cols) with cols a large multiple of 128 dividing `total`."""
    for cols in (8192, 4096, 2048, 1024, 512, 256, 128):
        if total % cols == 0:
            return (total // cols, cols)
    return None


def _identity_copy_2d(x2d, *, donate=False):
    M, N = x2d.shape
    itemsize = jnp.dtype(x2d.dtype).itemsize
    min_sub = _min_sublane_tile(x2d.dtype)
    vmem_limit, budget = _tpu_vmem_config()

    row_bytes = N * itemsize
    total_bytes = M * row_bytes

    if min_sub * row_bytes > budget:
        # Very wide rows: a single (min_sub, N) slab would blow the VMEM budget.
        # Block N in multiples of 128 (lane-dense) on a second grid axis.
        tm = M if M < min_sub else min_sub
        lanes_fit = max(_LANE, budget // max(1, min_sub * itemsize))
        tn = (lanes_fit // _LANE) * _LANE
        if tn >= N:
            tn = N
        grid = (pl.cdiv(M, tm), pl.cdiv(N, tn))
        in_specs = [pl.BlockSpec((tm, tn), lambda i, j: (i, j))]
        out_specs = pl.BlockSpec((tm, tn), lambda i, j: (i, j))
        dim_sem = ("parallel", "parallel")
    else:
        # Lane-dense full-N row tiles, as big as the budget allows.
        rows_fit = max(1, budget // max(1, row_bytes))
        tm = max(min_sub, (rows_fit // min_sub) * min_sub)
        if tm >= M:
            tm = M
            # For large arrays, keep at least 2 grid steps so the "parallel"
            # axis can shard the copy across v7x's two TensorCores.
            if M > min_sub and total_bytes > (4 << 20):
                half = ((M + 2 * min_sub - 1) // (2 * min_sub)) * min_sub
                if 0 < half < M:
                    tm = half
        grid = (pl.cdiv(M, tm),)
        in_specs = [pl.BlockSpec((tm, N), lambda i: (i, 0))]
        out_specs = pl.BlockSpec((tm, N), lambda i: (i, 0))
        dim_sem = ("parallel",)

    extra_kwargs = {}
    if donate:
        # Only alias when the caller actually donates x; otherwise XLA inserts
        # a defensive copy and doubles HBM traffic.
        extra_kwargs["input_output_aliases"] = {0: 0}

    return pl.pallas_call(
        identity_kernel,
        out_shape=jax.ShapeDtypeStruct((M, N), x2d.dtype),
        grid_spec=pltpu.PrefetchScalarGridSpec(
            num_scalar_prefetch=0,
            grid=grid,
            in_specs=in_specs,
            out_specs=out_specs,
        ),
        compiler_params=pltpu.CompilerParams(
            dimension_semantics=dim_sem,
            vmem_limit_bytes=vmem_limit,
        ),
        **extra_kwargs,
    )(x2d)


def llm_adapter_test_forward(x, *, donate=False, force_kernel=False,
                             small_bytes_cutoff=1 << 20):
    """Pallas implementation of LLMadapter_test.forward (identity)."""
    nbytes = x.size * jnp.dtype(x.dtype).itemsize
    # Fast path: an identity needs zero HBM traffic; skip the kernel (and its
    # launch overhead) unless explicitly asked to exercise the copy path.
    if not force_kernel and (x.size == 0 or nbytes < small_bytes_cutoff):
        return x

    orig_shape = x.shape
    total = max(1, int(x.size))

    if x.ndim >= 2 and x.shape[-1] >= _LANE and x.shape[-1] % _LANE == 0:
        x2d = x.reshape(-1, x.shape[-1])
    else:
        # Identity is layout-agnostic: present a lane-dense 2-D slab so stores
        # are unmasked full-lane vst, not vst.msk partial stores.
        shp = _lane_dense_shape(total)
        x2d = x.reshape(shp) if shp is not None else x.reshape(1, total)

    y2d = _identity_copy_2d(x2d, donate=donate)
    return y2d.reshape(orig_shape)


if __name__ == "__main__":
    key = jax.random.PRNGKey(0)

    # Small adapter-style input: [batch, seq, hidden] with lane-dense last dim.
    x = jax.random.normal(key, (2, 16, 256), dtype=jnp.float32)
    x_host = np.asarray(jax.device_get(x))

    # Exercise the Pallas copy path explicitly.
    y = llm_adapter_test_forward(x, force_kernel=True)
    jax.block_until_ready(y)
    assert y.shape == x_host.shape and y.dtype == x_host.dtype
    assert np.array_equal(np.asarray(jax.device_get(y)), x_host)

    # Exercise the narrow-last-dim (lane-dense reshape) path.
    k2 = jax.random.PRNGKey(1)
    x2 = jax.random.normal(k2, (2, 8, 32), dtype=jnp.float32)
    x2_host = np.asarray(jax.device_get(x2))
    y2 = llm_adapter_test_forward(x2, force_kernel=True)
    jax.block_until_ready(y2)
    assert y2.shape == x2_host.shape
    assert np.array_equal(np.asarray(jax.device_get(y2)), x2_host)

    # Default (no-kernel) identity fast path.
    y3 = llm_adapter_test_forward(x)
    jax.block_until_ready(y3)
    assert np.array_equal(np.asarray(jax.device_get(y3)), x_host)

    print("KERNEL_OK")
</pallas_src>

<mosaic_0001>
module attributes {stable_mosaic.version = 11 : i64} {
  func.func @identity_kernel(%arg0: i32, %arg1: memref<32x256xf32, #tpu.memory_space<vmem>>, %arg2: memref<32x256xf32, #tpu.memory_space<vmem>>) attributes {dimension_semantics = [#tpu.dimension_semantics<parallel>], iteration_bounds = array<i64: 1>, scalar_prefetch = 0 : i64, scratch_operands = 0 : i64, tpu.core_type = #tpu.core_type<tc>, window_params = [{transform_indices = @transform_0, window_bounds = array<i64: 32, 256>}, {transform_indices = @transform_1, window_bounds = array<i64: 32, 256>}]} {
    %c0 = arith.constant 0 : index
    %c0_0 = arith.constant 0 : index
    %0 = vector.load %arg1[%c0, %c0_0] : memref<32x256xf32, #tpu.memory_space<vmem>>, vector<32x256xf32>
    %c0_1 = arith.constant 0 : index
    %c0_2 = arith.constant 0 : index
    %1 = vector.load %arg2[%c0_1, %c0_2] : memref<32x256xf32, #tpu.memory_space<vmem>>, vector<32x256xf32>
    tpu.vector_store %arg2[%c0_1, %c0_2], %0 {strides = array<i32>} : memref<32x256xf32, #tpu.memory_space<vmem>>, vector<32x256xf32>,
    return
  }
  func.func @transform_0(%arg0: i32) -> (i32, i32) {
    %c0_i32 = arith.constant 0 : i32
    %c0_i32_0 = arith.constant 0 : i32
    return %arg0, %c0_i32 : i32, i32
  }
  func.func @transform_1(%arg0: i32) -> (i32, i32) {
    %c0_i32 = arith.constant 0 : i32
    %c0_i32_0 = arith.constant 0 : i32
    return %arg0, %c0_i32 : i32, i32
  }
}

</mosaic_0001>

<bundles_post_ra>
// kernel: tpu_custom_call.1
= control target key start
LH: loop header
LB: loop body
LE: loop exit
PB: predicated region body
PF: predicated region fallthrough
CT: control target
= control target key end

     0   :  { %6 = vsyncpa [#allocation3], 0  ;;  %s130_s0 = inlined_call_operand.hbm [shape: f32[32,256], index: 0, kind: input, shape index: {}]   ;;  %s131_s1 = inlined_call_operand.hbm [shape: f32[32,256], index: 1, kind: output, shape index: {}]  }
   0x1   :  { %7 = vsyncpa [#allocation4], 0  ;;  %s104_s6 = smov [#allocation2]  }
   0x2   :  { %s13_s7 = sshll.u32 %s104_s6, 4  ;;  %s14_s7 = int_to_ptr.vmem [resolvable:$true] %s13_s7 }
   0x3   :  { %s68_s8 = scalar_lea.vmem %s14_s7, 1024  ;;  %p73_p1 = scmp.lt.s32.totalorder %s14_s7, %s14_s7 }
   0x4   :  { %p69_p0 = scmp.ne.s32.totalorder %s14_s7, %s68_s8  ;;  %p74_p2 = scmp.lt.s32.totalorder %s68_s8, %s68_s8 }
   0x6   :  { %p75_p3 = por %p74_p2, %p73_p1 }
   0x8   :  { %p76_p4 = pnand %p75_p3, %p69_p0 }
   0xa   :  { %79 = shalt.err (!%p76_p4)
}
   0xb   :  { %s105_s9 = smov 256   ;;  %s106_s10 = smov 16  }
   0xc   :  { %19 = dma.hbm_to_vmem [thread:$0]  %s130_s0, 1024, %s14_s7, [#allocation3], %s105_s9, %s105_s9, %s106_s10  }
   0xd   :  { %100 = dma.done.wait [#allocation3], 1024  }
   0xe   :  { %101 = vsyncadd [#allocation3], 4294966272  ;;  %s107_s13 = smov [#allocation5]   ;;  %v23_v0 = vld [vmem:[#allocation2] sm:$0xff]  ;;  %v24_v1 = vld [vmem:[#allocation2 + $0x8] sm:$0xff] }
   0xf   :  { %s44_s14 = sshll.u32 %s107_s13, 4  ;;  %v25_v2 = vld [vmem:[#allocation2 + $0x10] sm:$0xff]  ;;  %31 = vst [vmem:[#allocation5] sm:$0xff] %v23_v0  ;;  %32 = vst [vmem:[#allocation5 + $0x8] sm:$0xff] %v24_v1  ;;  %v26_v3 = vld [vmem:[#allocation2 + $0x18] sm:$0xff]  ;;  %s45_s14 = int_to_ptr.vmem [resolvable:$true] %s44_s14 }
  0x10   :  { %33 = vst [vmem:[#allocation5 + $0x10] sm:$0xff] %v25_v2  ;;  %v27_v4 = vld [vmem:[#allocation2 + $0x20] sm:$0xff]  ;;  %v28_v5 = vld [vmem:[#allocation2 + $0x28] sm:$0xff]  ;;  %34 = vst [vmem:[#allocation5 + $0x18] sm:$0xff] %v26_v3  ;;  %s80_s0 = scalar_lea.vmem %s45_s14, 1024  ;;  %p85_p6 = scmp.lt.s32.totalorder %s45_s14, %s45_s14 }
  0x11   :  { %35 = vst [vmem:[#allocation5 + $0x20] sm:$0xff] %v27_v4  ;;  %36 = vst [vmem:[#allocation5 + $0x28] sm:$0xff] %v28_v5  ;;  %v29_v6 = vld [vmem:[#allocation2 + $0x30] sm:$0xff]  ;;  %v30_v7 = vld [vmem:[#allocation2 + $0x38] sm:$0xff]  ;;  %p81_p5 = scmp.ne.s32.totalorder %s45_s14, %s80_s0  ;;  %p86_p7 = scmp.lt.s32.totalorder %s80_s0, %s80_s0 }
  0x12   :  { %37 = vst [vmem:[#allocation5 + $0x30] sm:$0xff] %v29_v6  ;;  %38 = vst [vmem:[#allocation5 + $0x38] sm:$0xff] %v30_v7 }
  0x13   :  { %p87_p8 = por %p86_p7, %p85_p6 }
  0x15   :  { %p88_p9 = pnand %p87_p8, %p81_p5 }
  0x17   :  { %91 = shalt.err (!%p88_p9)
}
  0x18   :  { %50 = dma.vmem_to_hbm [thread:$0]  %s45_s14, 1024, %s131_s1, [#allocation4], %s105_s9, %s105_s9, %s106_s10  }
  0x19   :  { %102 = dma.done.wait [#allocation4], 1024  }
  0x1a   :  { %103 = vsyncadd [#allocation4], 4294966272 }
  0x1b   :  { %54 = vsyncpa [#allocation3], 1 }
  0x1c   :  { %55 = vsyncpa [#allocation4], 1 }

</bundles_post_ra>
